<compile_context>
chip_gen: v5e
topology: v5e:2x2
jax: 0.10.0
libtpu: 0.0.40
codegen_flags: <defaults>
</compile_context>

<pallas_src>
import functools

import jax
import jax.numpy as jnp
from jax.experimental import pallas as pl
from jax.experimental.pallas import tpu as pltpu


def _round_up(n, m):
    return ((n + m - 1) // m) * m


def _dronet_kernel(x_ref,
                   w1_ref, b1_ref,
                   w2_ref, b2_ref,
                   w3_ref, b3_ref,
                   w4_ref, b4_ref,
                   out_ref, *, with_features):
    """Fused 4-layer MLP forward for one batch tile.

    feature_extractor: Linear -> ReLU -> (Dropout=id) -> Linear -> ReLU -> (Dropout=id)
    classifier       : Linear -> ReLU -> Linear
    """
    x = x_ref[...]          # (TB, input_dim)
    w1 = w1_ref[...]        # (input_dim, hidden)

    # --- layer 1: K = input_dim (tiny) -> VPU broadcast-MACs, keep the MXU out of it.
    h1 = b1_ref[...]                                   # (1, hidden), broadcasts up
    for d in range(w1.shape[0]):                       # static unroll (input_dim is tiny)
        h1 = h1 + x[:, d:d + 1] * w1[d:d + 1, :]
    h1 = jnp.maximum(h1, 0.0)

    # --- layer 2 (features) ---
    h2 = jnp.dot(h1, w2_ref[...], preferred_element_type=jnp.float32) + b2_ref[...]
    h2 = jnp.maximum(h2, 0.0)

    # --- classifier ---
    h3 = jnp.dot(h2, w3_ref[...], preferred_element_type=jnp.float32) + b3_ref[...]
    h3 = jnp.maximum(h3, 0.0)

    logits = jnp.dot(h3, w4_ref[...], preferred_element_type=jnp.float32) + b4_ref[...]

    if with_features:
        # w4/b4 are pre-padded so `logits` fills the remaining lanes of a 128-multiple
        # slab: one unmasked, lane-dense store of [features | logits(+pad)].
        out_ref[...] = jnp.concatenate([h2, logits], axis=-1)
    else:
        out_ref[...] = logits


def dronet_forward(x, params, return_features=False, tb_max=2048):
    """x: (B, input_dim) float32. params: PyTorch-convention weights (w: (out, in), b: (out,)).
    Returns logits (B, num_classes) and optionally features (B, hidden_dim)."""
    x = jnp.asarray(x, jnp.float32)
    B, input_dim = x.shape
    hidden_dim = params["w2"].shape[0]
    half_dim = params["w3"].shape[0]
    num_classes = params["w4"].shape[0]

    # Glue: pre-transpose weights to (in, out); biases to (1, out) for 2D layout.
    w1 = jnp.asarray(params["w1"], jnp.float32).T
    b1 = jnp.asarray(params["b1"], jnp.float32)[None, :]
    w2 = jnp.asarray(params["w2"], jnp.float32).T
    b2 = jnp.asarray(params["b2"], jnp.float32)[None, :]
    w3 = jnp.asarray(params["w3"], jnp.float32).T
    b3 = jnp.asarray(params["b3"], jnp.float32)[None, :]
    w4 = jnp.asarray(params["w4"], jnp.float32).T
    b4 = jnp.asarray(params["b4"], jnp.float32)[None, :]

    if return_features:
        # Pack [features | logits | pad] into a single lane-dense slab (width % 128 == 0).
        packed_width = _round_up(hidden_dim + num_classes, 128)
        logit_width = packed_width - hidden_dim
        w4 = jnp.pad(w4, ((0, 0), (0, logit_width - num_classes)))
        b4 = jnp.pad(b4, ((0, 0), (0, logit_width - num_classes)))
        out_width = packed_width
    else:
        out_width = num_classes

    # Batch tiling: pad B to a multiple of the tile, grid over batch.
    B8 = _round_up(max(B, 1), 8)
    tb = min(B8, tb_max)
    Bp = _round_up(B8, tb)
    if Bp != B:
        x = jnp.pad(x, ((0, Bp - B), (0, 0)))
    grid = (Bp // tb,)

    weight_args = (w1, b1, w2, b2, w3, b3, w4, b4)
    weight_specs = [pl.BlockSpec(a.shape, lambda i: (0, 0)) for a in weight_args]

    flops = 2 * Bp * (input_dim * hidden_dim
                      + hidden_dim * hidden_dim
                      + hidden_dim * half_dim
                      + half_dim * out_width)
    bytes_accessed = 4 * (x.size + sum(a.size for a in weight_args) + Bp * out_width)

    out = pl.pallas_call(
        functools.partial(_dronet_kernel, with_features=return_features),
        out_shape=jax.ShapeDtypeStruct((Bp, out_width), jnp.float32),
        grid=grid,
        in_specs=[pl.BlockSpec((tb, input_dim), lambda i: (i, 0))] + weight_specs,
        out_specs=pl.BlockSpec((tb, out_width), lambda i: (i, 0)),
        compiler_params=pltpu.CompilerParams(dimension_semantics=("parallel",)),
        cost_estimate=pl.CostEstimate(flops=flops, transcendentals=0,
                                      bytes_accessed=bytes_accessed),
    )(x, *weight_args)

    if return_features:
        features = out[:B, :hidden_dim]
        logits = out[:B, hidden_dim:hidden_dim + num_classes]
        return logits, features
    return out[:B]


def init_dronet_params(key, input_dim=2, hidden_dim=64, num_classes=2):
    """Deterministic init mimicking torch.nn.Linear's U(-1/sqrt(fan_in), 1/sqrt(fan_in))."""
    dims = [
        (hidden_dim, input_dim),         # fe Linear 1
        (hidden_dim, hidden_dim),        # fe Linear 2
        (hidden_dim // 2, hidden_dim),   # clf Linear 1
        (num_classes, hidden_dim // 2),  # clf Linear 2
    ]
    params = {}
    for i, (out_f, in_f) in enumerate(dims, start=1):
        key, kw, kb = jax.random.split(key, 3)
        bound = 1.0 / jnp.sqrt(in_f)
        params[f"w{i}"] = jax.random.uniform(
            kw, (out_f, in_f), jnp.float32, minval=-bound, maxval=bound)
        params[f"b{i}"] = jax.random.uniform(
            kb, (out_f,), jnp.float32, minval=-bound, maxval=bound)
    return params


if __name__ == "__main__":
    key = jax.random.PRNGKey(0)
    key, k_x = jax.random.split(key)

    B, input_dim, hidden_dim, num_classes = 8, 2, 64, 2
    x = jax.random.normal(k_x, (B, input_dim), jnp.float32)
    params = init_dronet_params(key, input_dim, hidden_dim, num_classes)

    # return_features=True path (packed lane-dense output).
    outputs, features = dronet_forward(x, params, return_features=True)
    # return_features=False path (logits only; no feature writeback to HBM).
    outputs_only = dronet_forward(x, params, return_features=False)
    jax.block_until_ready((outputs, features, outputs_only))

    assert outputs.shape == (B, num_classes)
    assert features.shape == (B, hidden_dim)
    assert outputs_only.shape == (B, num_classes)

    # Pure-JAX reference check of the fused kernel.
    def ref(x, p):
        h = jnp.maximum(x @ p["w1"].T + p["b1"], 0.0)
        h = jnp.maximum(h @ p["w2"].T + p["b2"], 0.0)
        c = jnp.maximum(h @ p["w3"].T + p["b3"], 0.0)
        return c @ p["w4"].T + p["b4"], h

    ref_out, ref_feat = ref(x, params)
    assert jnp.allclose(outputs, ref_out, atol=1e-5, rtol=1e-5)
    assert jnp.allclose(features, ref_feat, atol=1e-5, rtol=1e-5)
    assert jnp.allclose(outputs_only, ref_out, atol=1e-5, rtol=1e-5)

    print("KERNEL_OK")
</pallas_src>

<mosaic_0001>
module attributes {stable_mosaic.version = 11 : i64} {
  func.func @_dronet_kernel(%arg0: i32, %arg1: memref<8x2xf32, #tpu.memory_space<vmem>>, %arg2: memref<2x64xf32, #tpu.memory_space<vmem>>, %arg3: memref<1x64xf32, #tpu.memory_space<vmem>>, %arg4: memref<64x64xf32, #tpu.memory_space<vmem>>, %arg5: memref<1x64xf32, #tpu.memory_space<vmem>>, %arg6: memref<64x32xf32, #tpu.memory_space<vmem>>, %arg7: memref<1x32xf32, #tpu.memory_space<vmem>>, %arg8: memref<32x64xf32, #tpu.memory_space<vmem>>, %arg9: memref<1x64xf32, #tpu.memory_space<vmem>>, %arg10: memref<8x128xf32, #tpu.memory_space<vmem>>) attributes {dimension_semantics = [#tpu.dimension_semantics<parallel>], iteration_bounds = array<i64: 1>, scalar_prefetch = 0 : i64, scratch_operands = 0 : i64, tpu.core_type = #tpu.core_type<tc>, window_params = [{transform_indices = @transform_0, window_bounds = array<i64: 8, 2>}, {pipeline_mode = #tpu.pipeline_mode<synchronous>, transform_indices = @transform_1, window_bounds = array<i64: 2, 64>}, {pipeline_mode = #tpu.pipeline_mode<synchronous>, transform_indices = @transform_2, window_bounds = array<i64: 1, 64>}, {pipeline_mode = #tpu.pipeline_mode<synchronous>, transform_indices = @transform_3, window_bounds = array<i64: 64, 64>}, {pipeline_mode = #tpu.pipeline_mode<synchronous>, transform_indices = @transform_4, window_bounds = array<i64: 1, 64>}, {pipeline_mode = #tpu.pipeline_mode<synchronous>, transform_indices = @transform_5, window_bounds = array<i64: 64, 32>}, {pipeline_mode = #tpu.pipeline_mode<synchronous>, transform_indices = @transform_6, window_bounds = array<i64: 1, 32>}, {pipeline_mode = #tpu.pipeline_mode<synchronous>, transform_indices = @transform_7, window_bounds = array<i64: 32, 64>}, {pipeline_mode = #tpu.pipeline_mode<synchronous>, transform_indices = @transform_8, window_bounds = array<i64: 1, 64>}, {transform_indices = @transform_9, window_bounds = array<i64: 8, 128>}]} {
    %c0 = arith.constant 0 : index
    %c0_0 = arith.constant 0 : index
    %0 = vector.load %arg1[%c0, %c0_0] : memref<8x2xf32, #tpu.memory_space<vmem>>, vector<8x2xf32>
    %c0_1 = arith.constant 0 : index
    %c0_2 = arith.constant 0 : index
    %1 = vector.load %arg2[%c0_1, %c0_2] : memref<2x64xf32, #tpu.memory_space<vmem>>, vector<2x64xf32>
    %c0_3 = arith.constant 0 : index
    %c0_4 = arith.constant 0 : index
    %2 = vector.load %arg3[%c0_3, %c0_4] : memref<1x64xf32, #tpu.memory_space<vmem>>, vector<1x64xf32>
    %3 = vector.extract_strided_slice %0 {offsets = [0, 0], sizes = [8, 1], strides = [1, 1]} : vector<8x2xf32> to vector<8x1xf32>
    %4 = vector.extract_strided_slice %1 {offsets = [0, 0], sizes = [1, 64], strides = [1, 1]} : vector<2x64xf32> to vector<1x64xf32>
    %5 = vector.broadcast %3 : vector<8x1xf32> to vector<8x64xf32>
    %6 = vector.broadcast %4 : vector<1x64xf32> to vector<8x64xf32>
    %7 = arith.mulf %5, %6 : vector<8x64xf32>
    %8 = vector.broadcast %2 : vector<1x64xf32> to vector<8x64xf32>
    %9 = arith.addf %8, %7 : vector<8x64xf32>
    %10 = vector.extract_strided_slice %0 {offsets = [0, 1], sizes = [8, 1], strides = [1, 1]} : vector<8x2xf32> to vector<8x1xf32>
    %11 = vector.extract_strided_slice %1 {offsets = [1, 0], sizes = [1, 64], strides = [1, 1]} : vector<2x64xf32> to vector<1x64xf32>
    %12 = vector.broadcast %10 : vector<8x1xf32> to vector<8x64xf32>
    %13 = vector.broadcast %11 : vector<1x64xf32> to vector<8x64xf32>
    %14 = arith.mulf %12, %13 : vector<8x64xf32>
    %15 = arith.addf %9, %14 : vector<8x64xf32>
    %cst = arith.constant 0.000000e+00 : f32
    %16 = vector.broadcast %cst : f32 to vector<8x64xf32>
    %17 = arith.maximumf %15, %16 : vector<8x64xf32>
    %c0_5 = arith.constant 0 : index
    %c0_6 = arith.constant 0 : index
    %18 = vector.load %arg4[%c0_5, %c0_6] : memref<64x64xf32, #tpu.memory_space<vmem>>, vector<64x64xf32>
    %cst_7 = arith.constant dense<0.000000e+00> : vector<8x64xf32>
    %19 = tpu.matmul %17, %18, %cst_7 {dimension_numbers = #tpu.dot_dimension_numbers<[1], [0], [0], [1], [0, 0, 1, 1], [], []>} : vector<8x64xf32>, vector<64x64xf32>, vector<8x64xf32> -> vector<8x64xf32>
    %c0_8 = arith.constant 0 : index
    %c0_9 = arith.constant 0 : index
    %20 = vector.load %arg5[%c0_8, %c0_9] : memref<1x64xf32, #tpu.memory_space<vmem>>, vector<1x64xf32>
    %21 = vector.broadcast %20 : vector<1x64xf32> to vector<8x64xf32>
    %22 = arith.addf %19, %21 : vector<8x64xf32>
    %cst_10 = arith.constant 0.000000e+00 : f32
    %23 = vector.broadcast %cst_10 : f32 to vector<8x64xf32>
    %24 = arith.maximumf %22, %23 : vector<8x64xf32>
    %c0_11 = arith.constant 0 : index
    %c0_12 = arith.constant 0 : index
    %25 = vector.load %arg6[%c0_11, %c0_12] : memref<64x32xf32, #tpu.memory_space<vmem>>, vector<64x32xf32>
    %cst_13 = arith.constant dense<0.000000e+00> : vector<8x32xf32>
    %26 = tpu.matmul %24, %25, %cst_13 {dimension_numbers = #tpu.dot_dimension_numbers<[1], [0], [0], [1], [0, 0, 1, 1], [], []>} : vector<8x64xf32>, vector<64x32xf32>, vector<8x32xf32> -> vector<8x32xf32>
    %c0_14 = arith.constant 0 : index
    %c0_15 = arith.constant 0 : index
    %27 = vector.load %arg7[%c0_14, %c0_15] : memref<1x32xf32, #tpu.memory_space<vmem>>, vector<1x32xf32>
    %28 = vector.broadcast %27 : vector<1x32xf32> to vector<8x32xf32>
    %29 = arith.addf %26, %28 : vector<8x32xf32>
    %cst_16 = arith.constant 0.000000e+00 : f32
    %30 = vector.broadcast %cst_16 : f32 to vector<8x32xf32>
    %31 = arith.maximumf %29, %30 : vector<8x32xf32>
    %c0_17 = arith.constant 0 : index
    %c0_18 = arith.constant 0 : index
    %32 = vector.load %arg8[%c0_17, %c0_18] : memref<32x64xf32, #tpu.memory_space<vmem>>, vector<32x64xf32>
    %cst_19 = arith.constant dense<0.000000e+00> : vector<8x64xf32>
    %33 = tpu.matmul %31, %32, %cst_19 {dimension_numbers = #tpu.dot_dimension_numbers<[1], [0], [0], [1], [0, 0, 1, 1], [], []>} : vector<8x32xf32>, vector<32x64xf32>, vector<8x64xf32> -> vector<8x64xf32>
    %c0_20 = arith.constant 0 : index
    %c0_21 = arith.constant 0 : index
    %34 = vector.load %arg9[%c0_20, %c0_21] : memref<1x64xf32, #tpu.memory_space<vmem>>, vector<1x64xf32>
    %35 = vector.broadcast %34 : vector<1x64xf32> to vector<8x64xf32>
    %36 = arith.addf %33, %35 : vector<8x64xf32>
    %37 = tpu.concatenate %24, %36 in 1 : vector<8x64xf32>, vector<8x64xf32> -> vector<8x128xf32>
    %c0_22 = arith.constant 0 : index
    %c0_23 = arith.constant 0 : index
    %38 = vector.load %arg10[%c0_22, %c0_23] : memref<8x128xf32, #tpu.memory_space<vmem>>, vector<8x128xf32>
    tpu.vector_store %arg10[%c0_22, %c0_23], %37 {strides = array<i32>} : memref<8x128xf32, #tpu.memory_space<vmem>>, vector<8x128xf32>,
    return
  }
  func.func @transform_0(%arg0: i32) -> (i32, i32) {
    %c0_i32 = arith.constant 0 : i32
    %c0_i32_0 = arith.constant 0 : i32
    return %arg0, %c0_i32 : i32, i32
  }
  func.func @transform_1(%arg0: i32) -> (i32, i32) {
    %c0_i32 = arith.constant 0 : i32
    %c0_i32_0 = arith.constant 0 : i32
    %c0_i32_1 = arith.constant 0 : i32
    return %c0_i32, %c0_i32_0 : i32, i32
  }
  func.func @transform_2(%arg0: i32) -> (i32, i32) {
    %c0_i32 = arith.constant 0 : i32
    %c0_i32_0 = arith.constant 0 : i32
    %c0_i32_1 = arith.constant 0 : i32
    return %c0_i32, %c0_i32_0 : i32, i32
  }
  func.func @transform_3(%arg0: i32) -> (i32, i32) {
    %c0_i32 = arith.constant 0 : i32
    %c0_i32_0 = arith.constant 0 : i32
    %c0_i32_1 = arith.constant 0 : i32
    return %c0_i32, %c0_i32_0 : i32, i32
  }
  func.func @transform_4(%arg0: i32) -> (i32, i32) {
    %c0_i32 = arith.constant 0 : i32
    %c0_i32_0 = arith.constant 0 : i32
    %c0_i32_1 = arith.constant 0 : i32
    return %c0_i32, %c0_i32_0 : i32, i32
  }
  func.func @transform_5(%arg0: i32) -> (i32, i32) {
    %c0_i32 = arith.constant 0 : i32
    %c0_i32_0 = arith.constant 0 : i32
    %c0_i32_1 = arith.constant 0 : i32
    return %c0_i32, %c0_i32_0 : i32, i32
  }
  func.func @transform_6(%arg0: i32) -> (i32, i32) {
    %c0_i32 = arith.constant 0 : i32
    %c0_i32_0 = arith.constant 0 : i32
    %c0_i32_1 = arith.constant 0 : i32
    return %c0_i32, %c0_i32_0 : i32, i32
  }
  func.func @transform_7(%arg0: i32) -> (i32, i32) {
    %c0_i32 = arith.constant 0 : i32
    %c0_i32_0 = arith.constant 0 : i32
    %c0_i32_1 = arith.constant 0 : i32
    return %c0_i32, %c0_i32_0 : i32, i32
  }
  func.func @transform_8(%arg0: i32) -> (i32, i32) {
    %c0_i32 = arith.constant 0 : i32
    %c0_i32_0 = arith.constant 0 : i32
    %c0_i32_1 = arith.constant 0 : i32
    return %c0_i32, %c0_i32_0 : i32, i32
  }
  func.func @transform_9(%arg0: i32) -> (i32, i32) {
    %c0_i32 = arith.constant 0 : i32
    %c0_i32_0 = arith.constant 0 : i32
    return %arg0, %c0_i32 : i32, i32
  }
}

</mosaic_0001>

<bundles_post_ra>
// kernel: tpu_custom_call.1
= control target key start
LH: loop header
LB: loop body
LE: loop exit
PB: predicated region body
PF: predicated region fallthrough
CT: control target
= control target key end

     0   :  { %v221_v1 = vmov 0   ;;  %s359_s0 = inlined_call_operand.vmem [shape: f32[8,2], index: 0, kind: input, shape index: {}]   ;;  %s360_s1 = inlined_call_operand.vmem [shape: f32[2,64], index: 1, kind: input, shape index: {}]   ;;  %s361_s2 = inlined_call_operand.vmem [shape: f32[1,64], index: 2, kind: input, shape index: {}]   ;;  %s362_s3 = inlined_call_operand.vmem [shape: f32[64,64], index: 3, kind: input, shape index: {}]   ;;  %s363_s4 = inlined_call_operand.vmem [shape: f32[1,64], index: 4, kind: input, shape index: {}]   ;;  %s364_s5 = inlined_call_operand.vmem [shape: f32[64,32], index: 5, kind: input, shape index: {}]   ;;  %s365_s6 = inlined_call_operand.vmem [shape: f32[1,32], index: 6, kind: input, shape index: {}]   ;;  %s366_s7 = inlined_call_operand.vmem [shape: f32[32,64], index: 7, kind: input, shape index: {}]   ;;  %s367_s8 = inlined_call_operand.vmem [shape: f32[1,64], index: 8, kind: input, shape index: {}]   ;;  %s368_s9 = inlined_call_operand.hbm [shape: f32[8,128], index: 9, kind: output, shape index: {}]  }
   0x1   :  { %v33_v0 = vld [vmem:[%s359_s0] sm:$0xff]  ;;  %189 = vset.pattern.permute.xlu0 %v221_v1 }
   0x2   :  { %38 = vperm.xlu0 %189, %v33_v0  }
   0x3   :  { %14 = vsyncpa [#allocation3], 0  ;;  %v222_v2 = vmov 1   ;;  %v62_v3 = vld [vmem:[%s362_s3 + $0x38] sm:$0xff]  ;;  %v61_v4 = vld [vmem:[%s362_s3 + $0x30] sm:$0xff]  ;;  %vm67_vm0 = vcmask 523264  }
   0x4   :  { %79 = vmatpush.msra.mxu0 %v62_v3  ;;  %v60_v5 = vld [vmem:[%s362_s3 + $0x28] sm:$0xff]  ;;  %v59_v6 = vld [vmem:[%s362_s3 + $0x20] sm:$0xff]  ;;  %v58_v7 = vld [vmem:[%s362_s3 + $0x18] sm:$0xff]  ;;  %vm136_vm1 = vcmask 261120   ;;  %s223_s12 = smov 64   ;;  %s173_s15 = sshll.u32 %s368_s9, 4  ;;  %s174_s15 = int_to_ptr.hbm [resolvable:$true] %s173_s15 }
   0x5   :  { %v57_v8 = vld [vmem:[%s362_s3 + $0x10] sm:$0xff]  ;;  %v56_v9 = vld [vmem:[%s362_s3 + $0x8] sm:$0xff]  ;;  %v55_v10 = vld [vmem:[%s362_s3] sm:$0xff]  ;;  %s224_s3 = smov [#allocation2]  }
   0x6   :  { %80 = vmatpush.msra.mxu0 %v61_v4  ;;  %v99_v11 = vld [vmem:[%s364_s5 + $0x38] sm:$0xff]  ;;  %v98_v12 = vld [vmem:[%s364_s5 + $0x30] sm:$0xff]  ;;  %v97_v13 = vld [vmem:[%s364_s5 + $0x28] sm:$0xff] }
   0x7   :  { %115 = vmatpush.msra.mxu1 %v99_v11  ;;  %v96_v14 = vld [vmem:[%s364_s5 + $0x20] sm:$0xff]  ;;  %v95_v15 = vld [vmem:[%s364_s5 + $0x18] sm:$0xff]  ;;  %v94_v27 = vld [vmem:[%s364_s5 + $0x10] sm:$0xff] }
   0x8   :  { %81 = vmatpush.msra.mxu0 %v60_v5  ;;  %v34_v16 = vld [vmem:[%s360_s1] sm:$0x3]  ;;  %v93_v28 = vld [vmem:[%s364_s5 + $0x8] sm:$0xff]  ;;  %v131_v30 = vld [vmem:[%s366_s7 + $0x18] sm:$0xff] }
   0x9   :  { %116 = vmatpush.msra.mxu1 %v98_v12  ;;  %v41_v18 = vperm.slane %v34_v16, 0  ;;  %v191_v19 = vld [vmem:[%s361_s2] ss:$0 sm:$0xff]  ;;  %v51_v21 = vperm.slane %v34_v16, 1  ;;  %152 = vmatpush.msra.mxu2 %v131_v30  ;;  %v130_v35 = vld [vmem:[%s366_s7 + $0x10] sm:$0xff]  ;;  %v129_v36 = vld [vmem:[%s366_s7 + $0x8] sm:$0xff] }
   0xa   :  { %190 = vset.pattern.permute.xlu0 %v222_v2  ;;  %82 = vmatpush.msra.mxu0 %v59_v6  ;;  %v92_v29 = vld [vmem:[%s364_s5] sm:$0xff] }
   0xb   :  { %48 = vperm.xlu0 %190, %v33_v0   ;;  %117 = vmatpush.msra.mxu1 %v97_v13  ;;  %v192_v31 = vld [vmem:[%s363_s4] ss:$0 sm:$0xff] }
   0xc   :  { %83 = vmatpush.msra.mxu0 %v58_v7  ;;  %153 = vmatpush.msra.mxu2 %v130_v35  ;;  %v128_v37 = vld [vmem:[%s366_s7] sm:$0xff]  ;;  %s171_s7 = sshll.u32 %s224_s3, 4  ;;  %s172_s7 = int_to_ptr.vmem [resolvable:$true] %s171_s7 }
   0xd   :  { %118 = vmatpush.msra.mxu1 %v96_v14  ;;  %v193_v38 = vld [vmem:[%s365_s6] ss:$0 sm:$0xff] }
   0xe   :  { %84 = vmatpush.msra.mxu0 %v57_v8  ;;  %154 = vmatpush.msra.mxu2 %v129_v36  ;;  %v194_v42 = vld [vmem:[%s367_s8] ss:$0 sm:$0xff] }
   0xf   :  { %119 = vmatpush.msra.mxu1 %v95_v15 }
  0x10   :  { %85 = vmatpush.msra.mxu0 %v56_v9  ;;  %155 = vmatpush.msra.mxu2 %v128_v37 }
  0x11   :  { %120 = vmatpush.msra.mxu1 %v94_v27 }
  0x12   :  { %86 = vmatpush.msra.mxu0 %v55_v10 }
  0x13   :  { %121 = vmatpush.msra.mxu1 %v93_v28 }
  0x15   :  { %122 = vmatpush.msra.mxu1 %v92_v29 }
  0x74   :  { %v39_v17 = vpop.permute.xlu0 %38 }
  0x75   :  { %v42_v20 = vmul.f32 %v41_v18, %v39_v17 }
  0x77   :  { %v46_v23 = vadd.f32 %v191_v19, %v42_v20 }
  0x7d   :  { %v49_v22 = vpop.permute.xlu0 %48 }
  0x7e   :  { %v52_v24 = vmul.f32 %v51_v21, %v49_v22 }
  0x80   :  { %v53_v25 = vadd.f32 %v52_v24, %v46_v23 }
  0x82   :  { %v54_v26 = vmax.f32 %v53_v25, 0.0 }
  0x84   :  { %182 = vmatmul.msk.f32.vlgmr.msra.gmra.mxu0 %vm67_vm0, %v54_v26 }
 0x101   :  { %v88_v32 = vpop.f32.mrf.mxu0 }
 0x102   :  { %v89_v33 = vadd.f32 %v192_v31, %v88_v32 }
 0x104   :  { %v91_v34 = vmax.f32 %v89_v33, 0.0 }
 0x106   :  { %183 = vmatmul.msk.f32.vlgmr.msra.gmra.mxu1 %vm67_vm0, %v91_v34 }
 0x183   :  { %v124_v39 = vpop.f32.mrf.mxu1 }
 0x184   :  { %v125_v40 = vadd.f32 %v193_v38, %v124_v39 }
 0x186   :  { %v127_v41 = vmax.f32 %v125_v40, 0.0 }
 0x188   :  { %184 = vmatmul.msk.f32.vlgmr.msra.gmra.mxu2 %vm136_vm1, %v127_v41 }
 0x20b   :  { %v157_v43 = vpop.f32.mrf.mxu2 }
 0x20c   :  { %v158_v44 = vadd.f32 %v194_v42, %v157_v43 }
 0x20e   :  { %161 = vrot.lane.b32.xlu1 %v158_v44, %s223_s12 }
 0x280   :  { %v162_v45 = vpop.permute.xlu1 %161 }
 0x281   :  { %v164_v46 = vsel %vm67_vm0, %v91_v34, %v162_v45 }
 0x282   :  { %165 = vst [vmem:[#allocation2] sm:$0xff] %v164_v46 }
 0x283   :  { %176 = dma.vmem_to_hbm [thread:$0]  %s172_s7, 128, %s174_s15, [#allocation3]  }
 0x284   :  { %219 = dma.done.wait [#allocation3], 128  }
 0x285   :  { %220 = vsyncadd [#allocation3], 4294967168 }
 0x286   :  { %181 = vsyncpa [#allocation3], 1 }

</bundles_post_ra>
